<compile_context>
chip_gen: v6e
topology: v6e:2x2x1
jax: 0.10.0
libtpu: 0.0.40
codegen_flags: <defaults>
</compile_context>

<pallas_src>
import jax
import jax.numpy as jnp
from jax.experimental import pallas as pl
from jax.experimental.pallas import tpu as pltpu

INPUT_DIM = 1
N_LAYERS = 2
N_NEURONS = 32
OUTPUT_DIM = 1

# Column indices inside the packed (N_NEURONS, 5) "vector slab".
_COL_W1 = 0   # layer-1 weights (in_features=1 -> just the 32 output weights)
_COL_B1 = 1   # layer-1 bias
_COL_B2 = 2   # layer-2 bias
_COL_W3 = 3   # head weights (the 32 input weights of the 32->1 layer)
_COL_B3 = 4   # head bias, stored at row 0 of this column

_N_VEC_COLS = 5
_TB_MAX = 2048  # batch-tile (lane) width; tiny vs. VMEM on v5e/v6e/v7x


def _bnn_kernel(xT_ref, w2_ref, vec_ref, out_ref):
    """One batch tile of the fused 3-layer Bayesian MLP (feature-major layout)."""
    x = xT_ref[...]                                   # (1, TB)
    vec = vec_ref[...]                                # (32, 5) packed vectors

    w1 = vec[:, _COL_W1:_COL_W1 + 1]                  # (32, 1)
    b1 = vec[:, _COL_B1:_COL_B1 + 1]                  # (32, 1)
    b2 = vec[:, _COL_B2:_COL_B2 + 1]                  # (32, 1)
    w3 = vec[:, _COL_W3:_COL_W3 + 1]                  # (32, 1)
    b3 = vec[0:1, _COL_B3:_COL_B3 + 1]                # (1, 1)

    # Layer 1 (1 -> 32): K=1 matmul is an outer product -> VPU broadcast mul.
    h = jnp.maximum(w1 * x + b1, 0.0)                 # (32, TB)

    # Layer 2 (32 -> 32): the only real matmul -> MXU, N = TB fills the lanes.
    h = jnp.dot(w2_ref[...], h, preferred_element_type=jnp.float32) + b2
    h = jnp.maximum(h, 0.0)                           # (32, TB)

    # Layer 3 (32 -> 1): N=1 matmul is a reduction -> VPU mul + sublane reduce.
    out_ref[...] = jnp.sum(h * w3, axis=0, keepdims=True) + b3   # (1, TB)


def _round_up(x, m):
    return (x + m - 1) // m * m


def _sample(mu, log_sigma, eps):
    # Reparameterized sample: mu + exp(log_sigma) * eps (== torch.randn_like path).
    return mu + jnp.exp(log_sigma) * eps


@jax.jit
def bayesian_nn_forward(x, params, eps):
    """x: (B, 1) f32. Returns (B, 1) f32."""
    B = x.shape[0]
    TB = min(_TB_MAX, _round_up(B, 128))
    B_pad = _round_up(B, TB)
    grid = (B_pad // TB,)

    # ---- grid-invariant setup (once, in the wrapper; XLA fuses it) ---------
    # Sampled weights kept in PyTorch (out, in) layout, which is exactly what
    # the feature-major kernel wants (y = W @ x).
    w1 = _sample(params[0]["weight_mu"], params[0]["weight_log_sigma"], eps[0]["weight"])  # (32, 1)
    b1 = _sample(params[0]["bias_mu"], params[0]["bias_log_sigma"], eps[0]["bias"])        # (32,)
    w2 = _sample(params[1]["weight_mu"], params[1]["weight_log_sigma"], eps[1]["weight"])  # (32, 32)
    b2 = _sample(params[1]["bias_mu"], params[1]["bias_log_sigma"], eps[1]["bias"])        # (32,)
    w3 = _sample(params[2]["weight_mu"], params[2]["weight_log_sigma"], eps[2]["weight"])  # (1, 32)
    b3 = _sample(params[2]["bias_mu"], params[2]["bias_log_sigma"], eps[2]["bias"])        # (1,)

    # Pack the five per-neuron vectors into one small slab: one DMA, one buffer.
    b3_col = jnp.zeros((N_NEURONS,), jnp.float32).at[0].set(b3[0])
    vec = jnp.stack([w1[:, 0], b1, b2, w3[0, :], b3_col], axis=1)  # (32, 5)

    # Feature-major, lane-padded input: (1, B_pad). Padded lanes are discarded.
    xT = jnp.pad(x.reshape(1, B).astype(jnp.float32), ((0, 0), (0, B_pad - B)))

    out = pl.pallas_call(
        _bnn_kernel,
        out_shape=jax.ShapeDtypeStruct((1, B_pad), jnp.float32),
        grid=grid,
        in_specs=[
            pl.BlockSpec((1, TB), lambda i: (0, i)),                   # x tile (pipelined)
            pl.BlockSpec((N_NEURONS, N_NEURONS), lambda i: (0, 0)),    # W2, VMEM-resident
            pl.BlockSpec((N_NEURONS, _N_VEC_COLS), lambda i: (0, 0)),  # packed vec slab, resident
        ],
        out_specs=pl.BlockSpec((1, TB), lambda i: (0, i)),             # lane-dense output
        compiler_params=pltpu.CompilerParams(
            dimension_semantics=("parallel",),   # batch tiles shard across TCs (v7x megacore)
        ),
    )(xT, w2, vec)

    return out.reshape(B_pad, 1)[:B]


def init_params(key):
    """Deterministic init matching the PyTorch module:
       mu ~ N(0, 0.1), log_sigma = -4. Weights kept in PyTorch (out, in) layout."""
    dims = [INPUT_DIM] + [N_NEURONS] * N_LAYERS + [OUTPUT_DIM]  # [1, 32, 32, 1]
    params = []
    for i in range(len(dims) - 1):
        fin, fout = dims[i], dims[i + 1]
        key, kw, kb = jax.random.split(key, 3)
        params.append(dict(
            weight_mu=0.1 * jax.random.normal(kw, (fout, fin), jnp.float32),
            weight_log_sigma=jnp.full((fout, fin), -4.0, jnp.float32),
            bias_mu=0.1 * jax.random.normal(kb, (fout,), jnp.float32),
            bias_log_sigma=jnp.full((fout,), -4.0, jnp.float32),
        ))
    return params


def sample_eps(key, params):
    """eps ~ N(0,1), same shapes as the parameters (torch.randn_like equivalent)."""
    eps = []
    for p in params:
        key, kw, kb = jax.random.split(key, 3)
        eps.append(dict(
            weight=jax.random.normal(kw, p["weight_mu"].shape, jnp.float32),
            bias=jax.random.normal(kb, p["bias_mu"].shape, jnp.float32),
        ))
    return eps


def reference_forward(x, params, eps):
    """Pure-JAX reference mirroring the PyTorch semantics (F.linear + ReLU)."""
    h = x
    n = len(params)
    for i, (p, e) in enumerate(zip(params, eps)):
        w = p["weight_mu"] + jnp.exp(p["weight_log_sigma"]) * e["weight"]  # (out, in)
        b = p["bias_mu"] + jnp.exp(p["bias_log_sigma"]) * e["bias"]        # (out,)
        h = h @ w.T + b
        if i < n - 1:
            h = jax.nn.relu(h)
    return h


if __name__ == "__main__":
    key = jax.random.PRNGKey(0)
    k_params, k_eps, k_x = jax.random.split(key, 3)

    params = init_params(k_params)
    eps = sample_eps(k_eps, params)

    batch = 8
    x = jax.random.normal(k_x, (batch, INPUT_DIM), jnp.float32)

    out = bayesian_nn_forward(x, params, eps)
    out = jax.block_until_ready(out)

    ref = reference_forward(x, params, eps)
    assert out.shape == (batch, OUTPUT_DIM), out.shape
    assert jnp.allclose(out, ref, atol=2e-5, rtol=1e-4), (out, ref)

    print("KERNEL_OK")
</pallas_src>

<mosaic_0001>
module attributes {stable_mosaic.version = 11 : i64} {
  func.func @_bnn_kernel(%arg0: i32, %arg1: memref<1x128xf32, #tpu.memory_space<vmem>>, %arg2: memref<32x32xf32, #tpu.memory_space<vmem>>, %arg3: memref<32x5xf32, #tpu.memory_space<vmem>>, %arg4: memref<1x128xf32, #tpu.memory_space<vmem>>) attributes {dimension_semantics = [#tpu.dimension_semantics<parallel>], iteration_bounds = array<i64: 1>, scalar_prefetch = 0 : i64, scratch_operands = 0 : i64, tpu.core_type = #tpu.core_type<tc>, window_params = [{transform_indices = @transform_0, window_bounds = array<i64: 1, 128>}, {pipeline_mode = #tpu.pipeline_mode<synchronous>, transform_indices = @transform_1, window_bounds = array<i64: 32, 32>}, {pipeline_mode = #tpu.pipeline_mode<synchronous>, transform_indices = @transform_2, window_bounds = array<i64: 32, 5>}, {transform_indices = @transform_3, window_bounds = array<i64: 1, 128>}]} {
    %c0 = arith.constant 0 : index
    %c0_0 = arith.constant 0 : index
    %0 = vector.load %arg1[%c0, %c0_0] : memref<1x128xf32, #tpu.memory_space<vmem>>, vector<1x128xf32>
    %c0_1 = arith.constant 0 : index
    %c0_2 = arith.constant 0 : index
    %1 = vector.load %arg3[%c0_1, %c0_2] : memref<32x5xf32, #tpu.memory_space<vmem>>, vector<32x5xf32>
    %2 = vector.extract_strided_slice %1 {offsets = [0, 0], sizes = [32, 1], strides = [1, 1]} : vector<32x5xf32> to vector<32x1xf32>
    %3 = vector.extract_strided_slice %1 {offsets = [0, 1], sizes = [32, 1], strides = [1, 1]} : vector<32x5xf32> to vector<32x1xf32>
    %4 = vector.extract_strided_slice %1 {offsets = [0, 2], sizes = [32, 1], strides = [1, 1]} : vector<32x5xf32> to vector<32x1xf32>
    %5 = vector.extract_strided_slice %1 {offsets = [0, 3], sizes = [32, 1], strides = [1, 1]} : vector<32x5xf32> to vector<32x1xf32>
    %6 = vector.extract_strided_slice %1 {offsets = [0, 4], sizes = [1, 1], strides = [1, 1]} : vector<32x5xf32> to vector<1x1xf32>
    %7 = vector.broadcast %2 : vector<32x1xf32> to vector<32x128xf32>
    %8 = vector.broadcast %0 : vector<1x128xf32> to vector<32x128xf32>
    %9 = arith.mulf %7, %8 : vector<32x128xf32>
    %10 = vector.broadcast %3 : vector<32x1xf32> to vector<32x128xf32>
    %11 = arith.addf %9, %10 : vector<32x128xf32>
    %cst = arith.constant 0.000000e+00 : f32
    %12 = vector.broadcast %cst : f32 to vector<32x128xf32>
    %13 = arith.maximumf %11, %12 : vector<32x128xf32>
    %c0_3 = arith.constant 0 : index
    %c0_4 = arith.constant 0 : index
    %14 = vector.load %arg2[%c0_3, %c0_4] : memref<32x32xf32, #tpu.memory_space<vmem>>, vector<32x32xf32>
    %cst_5 = arith.constant dense<0.000000e+00> : vector<32x128xf32>
    %15 = tpu.matmul %14, %13, %cst_5 {dimension_numbers = #tpu.dot_dimension_numbers<[1], [0], [0], [1], [0, 0, 1, 1], [], []>} : vector<32x32xf32>, vector<32x128xf32>, vector<32x128xf32> -> vector<32x128xf32>
    %16 = vector.broadcast %4 : vector<32x1xf32> to vector<32x128xf32>
    %17 = arith.addf %15, %16 : vector<32x128xf32>
    %cst_6 = arith.constant 0.000000e+00 : f32
    %18 = vector.broadcast %cst_6 : f32 to vector<32x128xf32>
    %19 = arith.maximumf %17, %18 : vector<32x128xf32>
    %20 = vector.broadcast %5 : vector<32x1xf32> to vector<32x128xf32>
    %21 = arith.mulf %19, %20 : vector<32x128xf32>
    %cst_7 = arith.constant dense<0.000000e+00> : vector<128xf32>
    %22 = vector.multi_reduction <add>, %21, %cst_7 [0] : vector<32x128xf32> to vector<128xf32>
    %23 = vector.shape_cast %22 : vector<128xf32> to vector<1x128xf32>
    %24 = vector.broadcast %6 : vector<1x1xf32> to vector<1x128xf32>
    %25 = arith.addf %23, %24 : vector<1x128xf32>
    %c0_8 = arith.constant 0 : index
    %c0_9 = arith.constant 0 : index
    %26 = vector.load %arg4[%c0_8, %c0_9] : memref<1x128xf32, #tpu.memory_space<vmem>>, vector<1x128xf32>
    tpu.vector_store %arg4[%c0_8, %c0_9], %25 {strides = array<i32>} : memref<1x128xf32, #tpu.memory_space<vmem>>, vector<1x128xf32>,
    return
  }
  func.func @transform_0(%arg0: i32) -> (i32, i32) {
    %c0_i32 = arith.constant 0 : i32
    %c0_i32_0 = arith.constant 0 : i32
    return %c0_i32, %arg0 : i32, i32
  }
  func.func @transform_1(%arg0: i32) -> (i32, i32) {
    %c0_i32 = arith.constant 0 : i32
    %c0_i32_0 = arith.constant 0 : i32
    %c0_i32_1 = arith.constant 0 : i32
    return %c0_i32, %c0_i32_0 : i32, i32
  }
  func.func @transform_2(%arg0: i32) -> (i32, i32) {
    %c0_i32 = arith.constant 0 : i32
    %c0_i32_0 = arith.constant 0 : i32
    %c0_i32_1 = arith.constant 0 : i32
    return %c0_i32, %c0_i32_0 : i32, i32
  }
  func.func @transform_3(%arg0: i32) -> (i32, i32) {
    %c0_i32 = arith.constant 0 : i32
    %c0_i32_0 = arith.constant 0 : i32
    return %c0_i32, %arg0 : i32, i32
  }
}

</mosaic_0001>

<bundles_post_ra>
// kernel: bayesian_nn_forward.1
= control target key start
LH: loop header
LB: loop body
LE: loop exit
PB: predicated region body
PF: predicated region fallthrough
CT: control target
= control target key end

     0   :  { %v285_v0 = vmov 1   ;;  %v286_v1 = vmov 0   ;;  %vm93_vm0 = vcmask 261120   ;;  %v287_v8 = vmov 2   ;;  %s344_s2 = inlined_call_operand.vmem [shape: f32[32,5], index: 2, kind: input, shape index: {}]   ;;  %s345_s1 = inlined_call_operand.vmem [shape: f32[32,32], index: 1, kind: input, shape index: {}]   ;;  %s346_s0 = inlined_call_operand.vmem [shape: f32[1,128], index: 0, kind: input, shape index: {}]   ;;  %s347_s3 = inlined_call_operand.vmem [shape: f32[1,128], index: 3, kind: output, shape index: {}]  }
   0x1   :  { %275 = vset.pattern.permute.xlu1 %v285_v0  ;;  %274 = vset.pattern.permute.xlu0 %v286_v1  ;;  %v18_v2 = vld [vmem:[%s344_s2 + $0x18] sm:$0xff]  ;;  %v17_v3 = vld [vmem:[%s344_s2 + $0x10] sm:$0xff]  ;;  %v16_v4 = vld [vmem:[%s344_s2 + $0x8] sm:$0xff]  ;;  %v288_v9 = vmov 3   ;;  %v289_v10 = vmov 4  }
   0x2   :  { %62 = vperm.xlu1 %275, %v18_v2   ;;  %36 = vperm.xlu0 %274, %v18_v2   ;;  %v15_v5 = vld [vmem:[%s344_s2] sm:$0xff]  ;;  %v75_v7 = vld [vmem:[%s345_s1 + $0x10] sm:$0xff]  ;;  %v74_v32 = vld [vmem:[%s345_s1 + $0x8] sm:$0xff] }
   0x3   :  { %v73_v6 = vld [vmem:[%s345_s1] sm:$0xff]  ;;  %258 = vmatprep.mubr.msk.f32.mxu1 %vm93_vm0, %v75_v7  ;;  %v76_v33 = vld [vmem:[%s345_s1 + $0x18] sm:$0xff] }
   0x4   :  { %255 = vmatprep.mubr.msk.f32.mxu0 %vm93_vm0, %v73_v6  ;;  %v234_v11 = vld [vmem:[%s346_s0] ss:$0 sm:$0xff] }
   0x6   :  { %276 = vset.pattern.permute.xlu1 %v286_v1  ;;  %31 = vperm.xlu0 %274, %v17_v3  }
   0x7   :  { %26 = vperm.xlu1 %276, %v16_v4  }
   0xa   :  { %277 = vset.pattern.permute.xlu0 %v285_v0 }
   0xb   :  { %58 = vperm.xlu0 %277, %v17_v3   ;;  %21 = vperm.xlu1 %276, %v15_v5  }
   0xf   :  { %50 = vperm.xlu0 %277, %v15_v5   ;;  %278 = vset.pattern.permute.xlu1 %v285_v0 }
  0x10   :  { %54 = vperm.xlu1 %278, %v16_v4  }
  0x13   :  { %280 = vset.pattern.permute.xlu0 %v287_v8 }
  0x14   :  { %279 = vset.pattern.permute.xlu1 %v287_v8  ;;  %82 = vperm.xlu0 %280, %v16_v4  }
  0x15   :  { %78 = vperm.xlu1 %279, %v15_v5  }
  0x18   :  { %281 = vset.pattern.permute.xlu0 %v288_v9 }
  0x19   :  { %86 = vperm.xlu1 %279, %v17_v3   ;;  %196 = vperm.xlu0 %281, %v15_v5  }
  0x1d   :  { %90 = vperm.xlu1 %279, %v18_v2   ;;  %208 = vperm.xlu0 %281, %v18_v2  }
  0x21   :  { %282 = vset.pattern.permute.xlu1 %v288_v9  ;;  %284 = vset.pattern.permute.xlu0 %v289_v10 }
  0x22   :  { %200 = vperm.xlu1 %282, %v16_v4  }
  0x26   :  { %204 = vperm.xlu1 %282, %v17_v3  }
  0x2a   :  { %283 = vset.pattern.permute.xlu1 %v289_v10 }
  0x2b   :  { %225 = vperm.xlu1 %283, %v15_v5  }
  0x7d   :  { %v63_v12 = vpop.permute.xlu1 %62  ;;  %v37_v13 = vpop.permute.xlu0 %36 }
  0x7e   :  { %v48_v14 = vmul.f32 %v234_v11, %v37_v13 }
  0x80   :  { %v68_v15 = vadd.f32 %v63_v12, %v48_v14 }
  0x81   :  { %v32_v16 = vpop.permute.xlu0 %31 }
  0x82   :  { %v72_v17 = vmax.f32 %v68_v15, 0.0  ;;  %v27_v18 = vpop.permute.xlu1 %26  ;;  %v47_v19 = vmul.f32 %v234_v11, %v32_v16 }
  0x83   :  { %v46_v24 = vmul.f32 %v234_v11, %v27_v18 }
  0x84   :  { %247 = vmatprep.subr.mxu0 %v72_v17  ;;  %261 = vmatprep.subr.mxu1 %v72_v17 }
  0x85   :  { %248 = vmatpush3.msra.mxu0 %v72_v17  ;;  %265 = vmatpush3.msra.mxu1 %v72_v17 }
  0x86   :  { %v59_v20 = vpop.permute.xlu0 %58  ;;  %v22_v21 = vpop.permute.xlu1 %21 }
  0x87   :  { %v67_v22 = vadd.f32 %v59_v20, %v47_v19  ;;  %v45_v25 = vmul.f32 %v234_v11, %v22_v21 }
  0x89   :  { %v71_v23 = vmax.f32 %v67_v22, 0.0 }
  0x8a   :  { %v51_v26 = vpop.permute.xlu0 %50 }
  0x8b   :  { %v55_v27 = vpop.permute.xlu1 %54  ;;  %249 = vmatprep.subr.mxu0 %v71_v23  ;;  %262 = vmatprep.subr.mxu1 %v71_v23  ;;  %v65_v28 = vadd.f32 %v51_v26, %v45_v25 }
  0x8c   :  { %v66_v29 = vadd.f32 %v55_v27, %v46_v24  ;;  %250 = vmatpush3.msra.mxu0 %v71_v23  ;;  %266 = vmatpush3.msra.mxu1 %v71_v23 }
  0x8d   :  { %v69_v31 = vmax.f32 %v65_v28, 0.0 }
  0x8e   :  { %v70_v30 = vmax.f32 %v66_v29, 0.0 }
  0x8f   :  { %v83_v36 = vpop.permute.xlu0 %82 }
  0x90   :  { %251 = vmatprep.subr.mxu0 %v70_v30  ;;  %263 = vmatprep.subr.mxu1 %v70_v30  ;;  %v79_v34 = vpop.permute.xlu1 %78 }
  0x91   :  { %252 = vmatpush3.msra.mxu0 %v70_v30  ;;  %267 = vmatpush3.msra.mxu1 %v70_v30 }
  0x92   :  { %253 = vmatprep.subr.mxu0 %v69_v31  ;;  %264 = vmatprep.subr.mxu1 %v69_v31 }
  0x93   :  { %254 = vmatpush3.msra.mxu0 %v69_v31  ;;  %268 = vmatpush3.msra.mxu1 %v69_v31 }
  0x94   :  { %256 = vmatmul.mubr.msk.f32.vlgmr.msra.gmra.mxu0 %vm93_vm0, %v74_v32  ;;  %259 = vmatmul.mubr.msk.f32.vlgmr.msra.gmra.mxu1 %vm93_vm0, %v76_v33  ;;  %v87_v35 = vpop.permute.xlu1 %86  ;;  %v197_v40 = vpop.permute.xlu0 %196 }
  0x98   :  { %v91_v37 = vpop.permute.xlu1 %90  ;;  %v209_v54 = vpop.permute.xlu0 %208 }
  0x9d   :  { %v201_v41 = vpop.permute.xlu1 %200 }
  0xa1   :  { %v205_v55 = vpop.permute.xlu1 %204 }
  0xa6   :  { %v226_v2 = vpop.permute.xlu1 %225 }
 0x154   :  { %v257_v38 = vpop.f32.mrf.mxu0  ;;  %v260_v39 = vpop.f32.mrf.mxu1 }
 0x155   :  { %v178_v42 = vadd.f32 %v257_v38, %v83_v36  ;;  %v188_v46 = vadd.f32 %v260_v39, %v91_v37 }
 0x156   :  { %v172_v43 = vpop.f32.mrf.mxu0  ;;  %v182_v44 = vpop.f32.mrf.mxu1 }
 0x157   :  { %v192_v45 = vmax.f32 %v178_v42, 0.0  ;;  %v173_v47 = vadd.f32 %v172_v43, %v79_v34  ;;  %v183_v48 = vadd.f32 %v182_v44, %v87_v35  ;;  %v194_v52 = vmax.f32 %v188_v46, 0.0 }
 0x159   :  { %v191_v49 = vmax.f32 %v173_v47, 0.0  ;;  %v193_v50 = vmax.f32 %v183_v48, 0.0  ;;  %v212_v51 = vmul.f32 %v201_v41, %v192_v45  ;;  %v214_v58 = vmul.f32 %v209_v54, %v194_v52 }
 0x15b   :  { %v211_v53 = vmul.f32 %v197_v40, %v191_v49  ;;  %v213_v56 = vmul.f32 %v205_v55, %v193_v50 }
 0x15d   :  { %v215_v57 = vadd.f32 %v212_v51, %v211_v53 }
 0x15f   :  { %v216_v59 = vadd.f32 %v215_v57, %v213_v56 }
 0x161   :  { %v217_v60 = vadd.f32 %v216_v59, %v214_v58 }
 0x163   :  { %v218_v61 = vrot.slane %v217_v60, 4 }
 0x165   :  { %v219_v62 = vadd.f32 %v218_v61, %v217_v60 }
 0x167   :  { %v220_v63 = vrot.slane %v219_v62, 2 }
 0x169   :  { %v221_v0 = vadd.f32 %v220_v63, %v219_v62 }
 0x16b   :  { %v222_v1 = vrot.slane %v221_v0, 1 }
 0x16d   :  { %v223_v3 = vadd.f32 %v222_v1, %v221_v0 }
 0x16f   :  { %v228_v4 = vadd.f32 %v226_v2, %v223_v3 }
 0x171   :  { %229 = vst [vmem:[%s347_s3] sm:$0x1] %v228_v4 }

</bundles_post_ra>
